<compile_context>
chip_gen: v5e
topology: v5e:2x2
jax: 0.10.0
libtpu: 0.0.40
codegen_flags: <defaults>
</compile_context>

<pallas_src>
import functools

import jax
import jax.numpy as jnp
import numpy as np
from jax.experimental import pallas as pl
from jax.experimental.pallas import tpu as pltpu

PAD_ID = 0


def _round_up(x, m):
    return ((x + m - 1) // m) * m


def _generation_defaults():
    """(target matmul rows per candidate group, vocab tile width, vmem limit bytes)."""
    kind = ""
    try:
        kind = jax.devices()[0].device_kind.lower()
    except Exception:
        pass
    if "v6" in kind or "trillium" in kind:
        # Worst compute:bandwidth ratio (918 TF/s vs ~1.4 TB/s): weight reuse
        # (rows) is the lever; 128 MiB physical VMEM -> raise the limit.
        return 1024, 2048, 110 * 1024 * 1024
    if "v7" in kind:
        # Only 64 MiB physical VMEM: smaller tiles + headroom for Mosaic scratch.
        return 512, 1024, 48 * 1024 * 1024
    if "v5" in kind:
        # v5e crosses the roofline at ~240 rows already; don't over-grow tiles.
        return 256, 1024, 64 * 1024 * 1024
    return 512, 1024, 64 * 1024 * 1024


def _vmem_bytes_estimate(rows, tv, hdim):
    """Rough double-buffered VMEM footprint of one grid step (bytes)."""
    hidden = 2 * rows * hdim * 2           # bf16 hidden tile, double buffered
    weight = 2 * hdim * tv * 2             # bf16 weight tile, double buffered
    tgt = 2 * rows * 128 * 4               # (rows, 1) i32, lane-padded to 128
    scratch = 3 * rows * 128 * 4           # m / l / target-logit f32 scratch
    live = 3 * rows * tv * 4               # f32 logits + exp/select temporaries
    small = 4 * 8 * 128 * 4                # denom + output blocks
    return hidden + weight + tgt + scratch + live + small


def _score_kernel(hid_ref, w_ref, tgt_ref, denom_ref, out_ref,
                  m_sc, l_sc, tl_sc, *, pad_id, tn, seq, tv, v_actual):
    # hid_ref:   (TN*S, H)  bf16 VMEM    w_ref:     (H, TV)   bf16 VMEM
    # tgt_ref:   (TN*S, 1)  i32  VMEM    denom_ref: (TN, 1)   f32  VMEM
    # out_ref:   (TN, 1)    f32  VMEM    scratch:   (TN*S, 1) f32 x3
    v_idx = pl.program_id(1)
    n_v = pl.num_programs(1)

    @pl.when(v_idx == 0)
    def _init():
        m_sc[...] = jnp.full_like(m_sc, -jnp.inf)
        l_sc[...] = jnp.zeros_like(l_sc)
        tl_sc[...] = jnp.zeros_like(tl_sc)

    # bf16 x bf16 -> f32 accumulation on the MXU.
    logits = jnp.dot(hid_ref[...], w_ref[...],
                     preferred_element_type=jnp.float32)        # (TN*S, TV)

    # (1, TV) lane iota + scalar tile offset; all compares broadcast against
    # it (no (TN*S, TV) iota materialization per tile).
    vocab_ids = (jax.lax.broadcasted_iota(jnp.int32, (1, tv), 1)
                 + v_idx * tv)                                   # (1, TV)

    if (v_actual % tv) != 0:
        # Only the last vocab tile actually contains padded lanes; on earlier
        # tiles the (1, TV) mask is all-true, so this is one select per vreg.
        logits = jnp.where(vocab_ids < v_actual, logits, -jnp.inf)

    # ---- online log-sum-exp over the vocab axis (f32) ----
    # TODO(synk): on v6e/v7x the exp could run in bf16 (EUP bf16 path) once
    # MXU-bound; kept f32 for v5e compatibility / numerical safety.
    m_prev = m_sc[...]
    m_new = jnp.maximum(m_prev, jnp.max(logits, axis=-1, keepdims=True))
    alpha = jnp.exp(m_prev - m_new)
    l_sc[...] = alpha * l_sc[...] + jnp.sum(jnp.exp(logits - m_new),
                                            axis=-1, keepdims=True)
    m_sc[...] = m_new

    # ---- target logit, accumulated across V tiles (exactly one tile hits).
    # Assumes every real target id < V (pad_id == 0 guarantees this here).
    tgt = tgt_ref[...]                                           # (TN*S, 1) i32
    tl_sc[...] += jnp.sum(jnp.where(vocab_ids == tgt, logits, 0.0),
                          axis=-1, keepdims=True)

    @pl.when(v_idx == n_v - 1)
    def _finalize():
        lse = m_sc[...] + jnp.log(l_sc[...])                     # (TN*S, 1)
        token_nll = lse - tl_sc[...]                             # (TN*S, 1)
        tok_mask = (tgt_ref[...] != pad_id).astype(jnp.float32)  # ignore_index
        masked = token_nll * tok_mask
        # (TN*S, 1) -> (TN, S, 1): S is a multiple of 8 so this is a pure
        # sublane split (no relayout); reduce over the token axis.
        per_cand = jnp.sum(masked.reshape(tn, seq, 1), axis=1)   # (TN, 1)
        out_ref[...] = -(per_cand / denom_ref[...])              # score = -nll


def backtranslate_scores(hidden, w_vocab, tgt, lens, pad_id=PAD_ID,
                         tn=None, tv=None):
    """hidden: (N,S,H) float, w_vocab: (H,V) float, tgt: (N,S) i32, lens: (N,) i32
    -> (N,) f32 scores (= -sum_t NLL_t / max(len - 1, 1))."""
    N, S, H = hidden.shape
    V = w_vocab.shape[1]

    if S % 8 != 0:
        # Keep per-candidate token count sublane aligned; extra positions score
        # against pad_id targets and are masked out.
        pad = _round_up(S, 8) - S
        hidden = jnp.pad(hidden, ((0, 0), (0, pad), (0, 0)))
        tgt = jnp.pad(tgt, ((0, 0), (0, pad)), constant_values=pad_id)
        S += pad

    rows_target, tv_default, vmem_limit = _generation_defaults()

    if tv is None:
        tv = min(tv_default, _round_up(V, 256))   # multiple of 256: full MXU lanes
    tv = max(128, _round_up(tv, 128))
    if tn is None:
        tn = -(-rows_target // S)                 # candidates per group
    tn = max(1, min(tn, N))                       # don't pad far past real work
    tn = max(8, _round_up(tn, 8))                 # sublane-aligned (tn,1) blocks

    # Shrink tiles until the double-buffered working set fits the VMEM budget.
    budget = int(0.75 * vmem_limit)
    while _vmem_bytes_estimate(tn * S, tv, H) > budget:
        if tv > 256:
            tv = max(256, _round_up(tv // 2, 128))
        elif tn > 8:
            tn = max(8, _round_up(tn // 2, 8))
        else:
            break

    n_pad = _round_up(N, tn)
    v_pad = _round_up(V, tv)

    if n_pad != N:
        hidden = jnp.pad(hidden, ((0, n_pad - N), (0, 0), (0, 0)))
        tgt = jnp.pad(tgt, ((0, n_pad - N), (0, 0)), constant_values=pad_id)
        lens = jnp.pad(lens, (0, n_pad - N), constant_values=2)
    if v_pad != V:
        w_vocab = jnp.pad(w_vocab, ((0, 0), (0, v_pad - V)))

    # bf16 MXU operands (no-op if the caller already holds bf16 weights).
    hidden2d = hidden.reshape(n_pad * S, H).astype(jnp.bfloat16)
    w_bf16 = w_vocab.astype(jnp.bfloat16)
    tgt2d = tgt.reshape(n_pad * S, 1).astype(jnp.int32)
    # NOTE: the torch reference divides by (len - 1) and would emit inf for
    # length-1 targets; we clamp the denominator to 1 (documented difference).
    denom = jnp.maximum(lens.astype(jnp.float32) - 1.0, 1.0).reshape(n_pad, 1)

    kernel = functools.partial(_score_kernel, pad_id=pad_id, tn=tn, seq=S,
                               tv=tv, v_actual=V)
    grid = (n_pad // tn, v_pad // tv)

    out = pl.pallas_call(
        kernel,
        out_shape=jax.ShapeDtypeStruct((n_pad, 1), jnp.float32),
        grid=grid,
        in_specs=[
            pl.BlockSpec((tn * S, H), lambda n, v: (n, 0)),
            # TODO(synk): pipeline_mode=pl.Buffered(3) here helps on v6e/v5e if
            # the weight DMA is still exposed and VMEM allows.
            pl.BlockSpec((H, tv), lambda n, v: (0, v)),
            pl.BlockSpec((tn * S, 1), lambda n, v: (n, 0)),
            pl.BlockSpec((tn, 1), lambda n, v: (n, 0)),
        ],
        out_specs=pl.BlockSpec((tn, 1), lambda n, v: (n, 0)),
        scratch_shapes=[
            pltpu.VMEM((tn * S, 1), jnp.float32),   # running max
            pltpu.VMEM((tn * S, 1), jnp.float32),   # running exp-sum
            pltpu.VMEM((tn * S, 1), jnp.float32),   # running target logit
        ],
        compiler_params=pltpu.CompilerParams(
            # candidates independent -> parallel (2 TCs on v7x); vocab is the
            # online-softmax reduction -> arbitrary and last in the grid.
            dimension_semantics=("parallel", "arbitrary"),
            vmem_limit_bytes=vmem_limit,
        ),
    )(hidden2d, w_bf16, tgt2d, denom)
    return out[:N, 0]


def backtranslate_reranker_forward(candidates, lengths, src_seq, src_lens,
                                   emb_table, w_vocab, pad_id=PAD_ID,
                                   sort=True, top1=True, topk=None,
                                   tn=None, tv=None):
    """Mirrors BacktranslateReranker.forward.

    candidates: (B, C, Lc) int32   lengths: (B, C) int32
    src_seq:    (B, S)    int32    src_lens: (B,)  int32
    returns (output (B, Lc), output_lens (B,), scores (B, C))
    """
    B, C, Lc = candidates.shape
    S = src_seq.shape[1]
    N = B * C

    cand_flat = candidates.reshape(N, Lc)
    _ = lengths.reshape(N)  # lengths_flattened (only fed to the external model in torch)

    # pad candidates up to the (8-aligned) target length
    S_eff = _round_up(S, 8)
    L = max(Lc, S_eff)
    if L > Lc:
        pad_toks = jnp.full((N, L - Lc), pad_id, dtype=cand_flat.dtype)
        cand_flat = jnp.concatenate([cand_flat, pad_toks], axis=1)

    tgt_seq_tiled = jnp.repeat(src_seq, C, axis=0)        # (N, S)
    if S_eff > S:
        tgt_seq_tiled = jnp.pad(tgt_seq_tiled, ((0, 0), (0, S_eff - S)),
                                constant_values=pad_id)
    tgt_lens_tiled = jnp.repeat(src_lens, C, axis=0)      # (N,)

    # Synthetic teacher-forced backtranslation "model": token embedding of the
    # (padded) candidate sequence; the vocab projection happens in the kernel.
    # Gather directly from the bf16 table so no f32 (N,S,H) intermediate +
    # separate cast pass is materialized.
    # TODO(synk): fuse this gather into the kernel via PrefetchScalarGridSpec
    # row-gather to remove the (N,S,H) HBM intermediate entirely.
    emb_bf16 = emb_table.astype(jnp.bfloat16)
    hidden = jnp.take(emb_bf16, cand_flat, axis=0)[:, :S_eff, :]   # (N, S_eff, H)

    scores_flat = backtranslate_scores(hidden, w_vocab, tgt_seq_tiled,
                                       tgt_lens_tiled, pad_id, tn=tn, tv=tv)
    scores = scores_flat.reshape(B, C)

    if sort:
        order = jnp.argsort(-scores, axis=1)              # descending
        scores = jnp.take_along_axis(scores, order, axis=1)
        candidates = jnp.take_along_axis(candidates, order[:, :, None], axis=1)

    if top1:
        output = candidates[:, 0, :]
    elif topk is not None:
        output = candidates[:, :topk, :]
    else:
        output = candidates[:, 0, :]

    output_lens = jnp.sum(output != pad_id, axis=-1)
    return output, output_lens, scores


if __name__ == "__main__":
    key = jax.random.PRNGKey(0)
    B, C, Lc, S, H, V = 2, 3, 6, 8, 32, 512
    k1, k2, k3, k4, k5 = jax.random.split(key, 5)

    # candidate sequences + lengths (pad_id = 0 beyond each candidate's length)
    cand = jax.random.randint(k1, (B, C, Lc), 1, V, dtype=jnp.int32)
    cand_lens = jax.random.randint(k2, (B, C), 3, Lc + 1, dtype=jnp.int32)
    cand = jnp.where(jnp.arange(Lc)[None, None, :] < cand_lens[:, :, None], cand, PAD_ID)

    # source (reranking target) sequences + lengths
    src = jax.random.randint(k3, (B, S), 1, V, dtype=jnp.int32)
    src_lens = jnp.array([S, S - 2], dtype=jnp.int32)
    src = jnp.where(jnp.arange(S)[None, :] < src_lens[:, None], src, PAD_ID)

    # deterministic synthetic model parameters; bf16 master copies so the
    # per-call .astype(bf16) inside the wrapper is a no-op (hoisted cast).
    emb_table = (jax.random.normal(k4, (V, H), dtype=jnp.float32) * 0.05
                 ).astype(jnp.bfloat16)
    w_vocab = (jax.random.normal(k5, (H, V), dtype=jnp.float32) * 0.1
               ).astype(jnp.bfloat16)

    # tv=128 forces several vocab tiles so the online log-softmax path runs.
    output, out_len, scores = backtranslate_reranker_forward(
        cand, cand_lens, src, src_lens, emb_table, w_vocab, tv=128)
    (output, out_len, scores) = jax.block_until_ready((output, out_len, scores))

    # pure-JAX reference for the scoring hot path (f32 math on the bf16 params)
    N = B * C
    cand_flat = jnp.concatenate(
        [cand.reshape(N, Lc),
         jnp.full((N, S - Lc), PAD_ID, dtype=cand.dtype)], axis=1)
    tgt = jnp.repeat(src, C, axis=0)
    lens = jnp.repeat(src_lens, C, axis=0)
    emb_f32 = emb_table.astype(jnp.float32)
    w_f32 = w_vocab.astype(jnp.float32)
    hidden_ref = jnp.take(emb_f32, cand_flat[:, :S], axis=0)
    logits_ref = jnp.einsum("nsh,hv->nsv", hidden_ref, w_f32)
    logp = jax.nn.log_softmax(logits_ref, axis=-1)
    tok_nll = -jnp.take_along_axis(logp, tgt[..., None], axis=-1)[..., 0]
    mask = (tgt != PAD_ID).astype(jnp.float32)
    ref_scores = -(jnp.sum(tok_nll * mask, axis=1) / (lens - 1).astype(jnp.float32))
    ref_scores = -jnp.sort(-ref_scores.reshape(B, C), axis=1)  # descending

    assert np.allclose(np.asarray(scores), np.asarray(ref_scores),
                       rtol=2e-2, atol=2e-2), (scores, ref_scores)
    assert output.shape == (B, Lc) and out_len.shape == (B,) and scores.shape == (B, C)

    print("KERNEL_OK")
</pallas_src>

<mosaic_0001>
module attributes {stable_mosaic.version = 11 : i64} {
  func.func @_score_kernel(%arg0: i32, %arg1: i32, %arg2: memref<64x32xbf16, #tpu.memory_space<vmem>>, %arg3: memref<32x128xbf16, #tpu.memory_space<vmem>>, %arg4: memref<64x1xi32, #tpu.memory_space<vmem>>, %arg5: memref<8x1xf32, #tpu.memory_space<vmem>>, %arg6: memref<8x1xf32, #tpu.memory_space<vmem>>, %arg7: memref<64x1xf32, #tpu.memory_space<vmem>>, %arg8: memref<64x1xf32, #tpu.memory_space<vmem>>, %arg9: memref<64x1xf32, #tpu.memory_space<vmem>>) attributes {dimension_semantics = [#tpu.dimension_semantics<parallel>, #tpu.dimension_semantics<arbitrary>], iteration_bounds = array<i64: 1, 4>, scalar_prefetch = 0 : i64, scratch_operands = 3 : i64, tpu.core_type = #tpu.core_type<tc>, window_params = [{transform_indices = @transform_0, window_bounds = array<i64: 64, 32>}, {transform_indices = @transform_1, window_bounds = array<i64: 32, 128>}, {transform_indices = @transform_2, window_bounds = array<i64: 64, 1>}, {transform_indices = @transform_3, window_bounds = array<i64: 8, 1>}, {transform_indices = @transform_4, window_bounds = array<i64: 8, 1>}]} {
    %c0_i32 = arith.constant 0 : i32
    %0 = arith.cmpi eq, %arg1, %c0_i32 : i32
    %1 = arith.extui %0 : i1 to i32
    %c0_i32_0 = arith.constant 0 : i32
    %2 = arith.cmpi ne, %1, %c0_i32_0 : i32
    scf.if %2 {
      %cst_23 = arith.constant 0xFF800000 : f32
      %40 = vector.broadcast %cst_23 : f32 to vector<64x1xf32>
      %c0_24 = arith.constant 0 : index
      %c0_25 = arith.constant 0 : index
      %41 = vector.load %arg7[%c0_24, %c0_25] : memref<64x1xf32, #tpu.memory_space<vmem>>, vector<64x1xf32>
      tpu.vector_store %arg7[%c0_24, %c0_25], %40 {strides = array<i32>} : memref<64x1xf32, #tpu.memory_space<vmem>>, vector<64x1xf32>,
      %cst_26 = arith.constant 0.000000e+00 : f32
      %42 = vector.broadcast %cst_26 : f32 to vector<64x1xf32>
      %c0_27 = arith.constant 0 : index
      %c0_28 = arith.constant 0 : index
      %43 = vector.load %arg8[%c0_27, %c0_28] : memref<64x1xf32, #tpu.memory_space<vmem>>, vector<64x1xf32>
      tpu.vector_store %arg8[%c0_27, %c0_28], %42 {strides = array<i32>} : memref<64x1xf32, #tpu.memory_space<vmem>>, vector<64x1xf32>,
      %cst_29 = arith.constant 0.000000e+00 : f32
      %44 = vector.broadcast %cst_29 : f32 to vector<64x1xf32>
      %c0_30 = arith.constant 0 : index
      %c0_31 = arith.constant 0 : index
      %45 = vector.load %arg9[%c0_30, %c0_31] : memref<64x1xf32, #tpu.memory_space<vmem>>, vector<64x1xf32>
      tpu.vector_store %arg9[%c0_30, %c0_31], %44 {strides = array<i32>} : memref<64x1xf32, #tpu.memory_space<vmem>>, vector<64x1xf32>,
    } else {
    }
    %c0 = arith.constant 0 : index
    %c0_1 = arith.constant 0 : index
    %3 = vector.load %arg2[%c0, %c0_1] : memref<64x32xbf16, #tpu.memory_space<vmem>>, vector<64x32xbf16>
    %c0_2 = arith.constant 0 : index
    %c0_3 = arith.constant 0 : index
    %4 = vector.load %arg3[%c0_2, %c0_3] : memref<32x128xbf16, #tpu.memory_space<vmem>>, vector<32x128xbf16>
    %cst = arith.constant dense<0.000000e+00> : vector<64x128xf32>
    %5 = tpu.matmul %3, %4, %cst {dimension_numbers = #tpu.dot_dimension_numbers<[1], [0], [0], [1], [0, 0, 1, 1], [], []>} : vector<64x32xbf16>, vector<32x128xbf16>, vector<64x128xf32> -> vector<64x128xf32>
    %6 = tpu.iota {dimensions = array<i32: 1>} : vector<1x128xi32>
    %c128_i32 = arith.constant 128 : i32
    %7 = arith.muli %arg1, %c128_i32 : i32
    %8 = vector.broadcast %7 : i32 to vector<1x128xi32>
    %9 = arith.addi %6, %8 : vector<1x128xi32>
    %c0_4 = arith.constant 0 : index
    %c0_5 = arith.constant 0 : index
    %10 = vector.load %arg7[%c0_4, %c0_5] : memref<64x1xf32, #tpu.memory_space<vmem>>, vector<64x1xf32>
    %cst_6 = arith.constant dense<0xFF800000> : vector<64xf32>
    %11 = vector.multi_reduction <maximumf>, %5, %cst_6 [1] : vector<64x128xf32> to vector<64xf32>
    %12 = vector.shape_cast %11 : vector<64xf32> to vector<64x1xf32>
    %13 = arith.maximumf %10, %12 : vector<64x1xf32>
    %14 = arith.subf %10, %13 : vector<64x1xf32>
    %15 = math.exp %14 : vector<64x1xf32>
    %c0_7 = arith.constant 0 : index
    %c0_8 = arith.constant 0 : index
    %16 = vector.load %arg8[%c0_7, %c0_8] : memref<64x1xf32, #tpu.memory_space<vmem>>, vector<64x1xf32>
    %17 = arith.mulf %15, %16 : vector<64x1xf32>
    %18 = vector.broadcast %13 : vector<64x1xf32> to vector<64x128xf32>
    %19 = arith.subf %5, %18 : vector<64x128xf32>
    %20 = math.exp %19 : vector<64x128xf32>
    %cst_9 = arith.constant dense<0.000000e+00> : vector<64xf32>
    %21 = vector.multi_reduction <add>, %20, %cst_9 [1] : vector<64x128xf32> to vector<64xf32>
    %22 = vector.shape_cast %21 : vector<64xf32> to vector<64x1xf32>
    %23 = arith.addf %17, %22 : vector<64x1xf32>
    %c0_10 = arith.constant 0 : index
    %c0_11 = arith.constant 0 : index
    %24 = vector.load %arg8[%c0_10, %c0_11] : memref<64x1xf32, #tpu.memory_space<vmem>>, vector<64x1xf32>
    tpu.vector_store %arg8[%c0_10, %c0_11], %23 {strides = array<i32>} : memref<64x1xf32, #tpu.memory_space<vmem>>, vector<64x1xf32>,
    %c0_12 = arith.constant 0 : index
    %c0_13 = arith.constant 0 : index
    %25 = vector.load %arg7[%c0_12, %c0_13] : memref<64x1xf32, #tpu.memory_space<vmem>>, vector<64x1xf32>
    tpu.vector_store %arg7[%c0_12, %c0_13], %13 {strides = array<i32>} : memref<64x1xf32, #tpu.memory_space<vmem>>, vector<64x1xf32>,
    %c0_14 = arith.constant 0 : index
    %c0_15 = arith.constant 0 : index
    %26 = vector.load %arg4[%c0_14, %c0_15] : memref<64x1xi32, #tpu.memory_space<vmem>>, vector<64x1xi32>
    %c0_16 = arith.constant 0 : index
    %c0_17 = arith.constant 0 : index
    %27 = vector.load %arg9[%c0_16, %c0_17] : memref<64x1xf32, #tpu.memory_space<vmem>>, vector<64x1xf32>
    %28 = vector.broadcast %9 : vector<1x128xi32> to vector<64x128xi32>
    %29 = vector.broadcast %26 : vector<64x1xi32> to vector<64x128xi32>
    %30 = arith.cmpi eq, %28, %29 : vector<64x128xi32>
    %cst_18 = arith.constant 0.000000e+00 : f32
    %31 = vector.broadcast %cst_18 : f32 to vector<64x128xf32>
    %32 = arith.select %30, %5, %31 : vector<64x128xi1>, vector<64x128xf32>
    %cst_19 = arith.constant dense<0.000000e+00> : vector<64xf32>
    %33 = vector.multi_reduction <add>, %32, %cst_19 [1] : vector<64x128xf32> to vector<64xf32>
    %34 = vector.shape_cast %33 : vector<64xf32> to vector<64x1xf32>
    %35 = arith.addf %27, %34 : vector<64x1xf32>
    %c0_20 = arith.constant 0 : index
    %c0_21 = arith.constant 0 : index
    %36 = vector.load %arg9[%c0_20, %c0_21] : memref<64x1xf32, #tpu.memory_space<vmem>>, vector<64x1xf32>
    tpu.vector_store %arg9[%c0_20, %c0_21], %35 {strides = array<i32>} : memref<64x1xf32, #tpu.memory_space<vmem>>, vector<64x1xf32>,
    %c3_i32 = arith.constant 3 : i32
    %37 = arith.cmpi eq, %arg1, %c3_i32 : i32
    %38 = arith.extui %37 : i1 to i32
    %c0_i32_22 = arith.constant 0 : i32
    %39 = arith.cmpi ne, %38, %c0_i32_22 : i32
    scf.if %39 {
      %c0_23 = arith.constant 0 : index
      %c0_24 = arith.constant 0 : index
      %40 = vector.load %arg7[%c0_23, %c0_24] : memref<64x1xf32, #tpu.memory_space<vmem>>, vector<64x1xf32>
      %c0_25 = arith.constant 0 : index
      %c0_26 = arith.constant 0 : index
      %41 = vector.load %arg8[%c0_25, %c0_26] : memref<64x1xf32, #tpu.memory_space<vmem>>, vector<64x1xf32>
      %42 = math.log %41 : vector<64x1xf32>
      %43 = arith.addf %40, %42 : vector<64x1xf32>
      %c0_27 = arith.constant 0 : index
      %c0_28 = arith.constant 0 : index
      %44 = vector.load %arg9[%c0_27, %c0_28] : memref<64x1xf32, #tpu.memory_space<vmem>>, vector<64x1xf32>
      %45 = arith.subf %43, %44 : vector<64x1xf32>
      %c0_29 = arith.constant 0 : index
      %c0_30 = arith.constant 0 : index
      %46 = vector.load %arg4[%c0_29, %c0_30] : memref<64x1xi32, #tpu.memory_space<vmem>>, vector<64x1xi32>
      %c0_i32_31 = arith.constant 0 : i32
      %47 = vector.broadcast %c0_i32_31 : i32 to vector<64x1xi32>
      %48 = arith.cmpi ne, %46, %47 : vector<64x1xi32>
      %49 = arith.extui %48 : vector<64x1xi1> to vector<64x1xi32>
      %50 = arith.sitofp %49 : vector<64x1xi32> to vector<64x1xf32>
      %51 = arith.mulf %45, %50 : vector<64x1xf32>
      %52 = vector.shape_cast %51 : vector<64x1xf32> to vector<8x8x1xf32>
      %cst_32 = arith.constant dense<0.000000e+00> : vector<8x1xf32>
      %53 = vector.multi_reduction <add>, %52, %cst_32 [1] : vector<8x8x1xf32> to vector<8x1xf32>
      %c0_33 = arith.constant 0 : index
      %c0_34 = arith.constant 0 : index
      %54 = vector.load %arg5[%c0_33, %c0_34] : memref<8x1xf32, #tpu.memory_space<vmem>>, vector<8x1xf32>
      %55 = arith.divf %53, %54 : vector<8x1xf32>
      %cst_35 = arith.constant 0.000000e+00 : f32
      %56 = vector.broadcast %cst_35 : f32 to vector<8x1xf32>
      %57 = arith.subf %56, %55 : vector<8x1xf32>
      %c0_36 = arith.constant 0 : index
      %c0_37 = arith.constant 0 : index
      %58 = vector.load %arg6[%c0_36, %c0_37] : memref<8x1xf32, #tpu.memory_space<vmem>>, vector<8x1xf32>
      tpu.vector_store %arg6[%c0_36, %c0_37], %57 {strides = array<i32>} : memref<8x1xf32, #tpu.memory_space<vmem>>, vector<8x1xf32>,
    } else {
    }
    return
  }
  func.func @transform_0(%arg0: i32, %arg1: i32) -> (i32, i32) {
    %c0_i32 = arith.constant 0 : i32
    %c0_i32_0 = arith.constant 0 : i32
    return %arg0, %c0_i32 : i32, i32
  }
  func.func @transform_1(%arg0: i32, %arg1: i32) -> (i32, i32) {
    %c0_i32 = arith.constant 0 : i32
    %c0_i32_0 = arith.constant 0 : i32
    return %c0_i32, %arg1 : i32, i32
  }
  func.func @transform_2(%arg0: i32, %arg1: i32) -> (i32, i32) {
    %c0_i32 = arith.constant 0 : i32
    %c0_i32_0 = arith.constant 0 : i32
    return %arg0, %c0_i32 : i32, i32
  }
  func.func @transform_3(%arg0: i32, %arg1: i32) -> (i32, i32) {
    %c0_i32 = arith.constant 0 : i32
    %c0_i32_0 = arith.constant 0 : i32
    return %arg0, %c0_i32 : i32, i32
  }
  func.func @transform_4(%arg0: i32, %arg1: i32) -> (i32, i32) {
    %c0_i32 = arith.constant 0 : i32
    %c0_i32_0 = arith.constant 0 : i32
    return %arg0, %c0_i32 : i32, i32
  }
}

</mosaic_0001>

<bundles_post_ra>
// kernel: tpu_custom_call.1
= control target key start
LH: loop header
LB: loop body
LE: loop exit
PB: predicated region body
PF: predicated region fallthrough
CT: control target
= control target key end

     0   :  { %s1396_s15 = smov 0   ;;  %s1398_s16 = smov 0   ;;  %s1984_s0 = inlined_call_operand.vmem [shape: bf16[64,32], index: 0, kind: input, shape index: {}]   ;;  %s1985_s1 = inlined_call_operand.vmem [shape: bf16[32,512], index: 1, kind: input, shape index: {}]   ;;  %s1986_s2 = inlined_call_operand.vmem [shape: s32[64,1], index: 2, kind: input, shape index: {}]   ;;  %s1987_s3 = inlined_call_operand.vmem [shape: f32[8,1], index: 3, kind: input, shape index: {}]   ;;  %s1988_s4 = inlined_call_operand.vmem [shape: f32[8,1], index: 4, kind: output, shape index: {}]  }
   0x1   :  { %s1400_s17 = smov 0   ;;  %s1402_s18 = smov 0  }
   0x2   :  { %s1404_s19 = smov 0  }
   0x3 LB: > { %s23_s20 = sadd.s32 1, %s1361_s18  ;;  %p66_p1 = scmp.ne.s32.totalorder %s1353_s16, %s1349_s15  ;;  %s1365_s19 = sphi %s1404_s19, %s14_s19   ;;  %s1361_s18 = sphi %s1402_s18, %s2023_s18   ;;  %s1357_s17 = sphi %s1400_s17, %s2022_s17   ;;  %s1353_s16 = sphi %s1398_s16, %s2021_s16   ;;  %s1349_s15 = sphi %s1396_s15, %s2020_s15  }
   0x4   : > { %p24_p0 = scmp.ge.s32.totalorder %s23_s20, 4  ;;  %p67_p2 = scmp.eq.s32.totalorder %s1365_s19, 0 }
   0x5   : > { %s59_s22 = sadd.s32 1, %s1353_s16  ;;  %p1157_p5 = scmp.ge.s32.totalorder %s1365_s19, 4 }
   0x6   : > { %s2025_s20 = smov (%p24_p0, %s23_s20), 0  ;;  %p68_p3 = por %p67_p2, %p66_p1 }
   0x7   : > { %s56_s21 = ssub.s32 %s1361_s18, %s2025_s20  ;;  %195 = sbr.rel (%p1157_p5) target bundleno = 20 (0x14), region = 28 }
   0x8   : > { %p57_p4 = scmp.eq.s32.totalorder %s56_s21, 0 }
   0xa   : > { %s1431_s23 = scalar_select %p57_p4, %s1353_s16, %s59_s22  }
   0xc   : > { %198 = sbr.rel (!%p68_p3) target bundleno = 20 (0x14), region = 32  ;;  %s200_s24 = sand.u32 (%p68_p3), 1, %s1353_s16  }
   0xd   : > { %s1159_s25 = sshll.u32 (%p68_p3), %s1361_s18, 2  ;;  %s1158_s26 = sshll.u32 (%p68_p3), %s200_s24, 4 }
   0xe   : > { %s204_s29 = scalar_lea.vmem (%p68_p3), %s1985_s1, %s1159_s25  ;;  %s202_s30 = scalar_lea.vmem (%p68_p3), [#allocation5], %s1158_s26 }
   0xf   : > { %v221_v0 = vld [vmem:[%s204_s29] sm:$0xf] (%p68_p3)  ;;  %v223_v1 = vld [vmem:[%s204_s29 + $0x10] sm:$0xf] (%p68_p3) }
  0x10   : > { %222 = vst [vmem:[%s202_s30] sm:$0xf] (%p68_p3), %v221_v0  ;;  %v225_v2 = vld [vmem:[%s204_s29 + $0x20] sm:$0xf] (%p68_p3)  ;;  %v227_v3 = vld [vmem:[%s204_s29 + $0x30] sm:$0xf] (%p68_p3) }
  0x11   : > { %224 = vst [vmem:[%s202_s30 + $0x4] sm:$0xf] %v223_v1 }
  0x12   : > { %226 = vst [vmem:[%s202_s30 + $0x8] sm:$0xf] %v225_v2 }
  0x13   : > { %228 = vst [vmem:[%s202_s30 + $0xc] sm:$0xf] %v227_v3 }
  0x14 PF: > { %p1160_p6 = scmp.ge.s32.totalorder %s1365_s19, 1  ;;  %p259_p7 = scmp.lt.s32.totalorder %s1365_s19, 5 }
  0x16   : > { %p260_p8 = pnand %p1160_p6, %p259_p7 }
  0x17   : > { %s266_s5 = sand.u32 (!%p260_p8), 1, %s1349_s15   ;;  %p1162_p9 = scmp.ne.s32.totalorder (!%p260_p8), %s1357_s17, 0 }
  0x18   : > { %263 = sbr.rel (%p260_p8) target bundleno = 670 (0x29e), region = 73  ;;  %s1442_s6 = sshll.u32 (!%p260_p8), %s266_s5, 4 }
  0x19   : > { %s268_s7 = scalar_lea.vmem (!%p260_p8), [#allocation5], %s1442_s6 }
  0x1d   : > { %328 = sbr.rel (%p1162_p9) target bundleno = 59 (0x3b), region = 81 }
  0x22   : > { %vm329_vm0 = vcmask 7168   ;;  %v1367_v4 = vmov -inf   ;;  %v1368_v5 = vmov 0.0  }
  0x23   : > { %330 = vst.msk [vmem:[#allocation2] sm:$0xff] %vm329_vm0, %v1367_v4 }
  0x24   : > { %331 = vst.msk [vmem:[#allocation2 + $0x8] sm:$0xff] %vm329_vm0, %v1367_v4 }
  0x25   : > { %332 = vst.msk [vmem:[#allocation2 + $0x10] sm:$0xff] %vm329_vm0, %v1367_v4 }
  0x26   : > { %333 = vst.msk [vmem:[#allocation2 + $0x18] sm:$0xff] %vm329_vm0, %v1367_v4 }
  0x27   : > { %334 = vst.msk [vmem:[#allocation2 + $0x20] sm:$0xff] %vm329_vm0, %v1367_v4 }
  0x28   : > { %335 = vst.msk [vmem:[#allocation2 + $0x28] sm:$0xff] %vm329_vm0, %v1367_v4 }
  0x29   : > { %336 = vst.msk [vmem:[#allocation2 + $0x30] sm:$0xff] %vm329_vm0, %v1367_v4 }
  0x2a   : > { %337 = vst.msk [vmem:[#allocation2 + $0x38] sm:$0xff] %vm329_vm0, %v1367_v4 }
  0x2b   : > { %338 = vst.msk [vmem:[#allocation3] sm:$0xff] %vm329_vm0, %v1368_v5 }
  0x2c   : > { %339 = vst.msk [vmem:[#allocation3 + $0x8] sm:$0xff] %vm329_vm0, %v1368_v5 }
  0x2d   : > { %340 = vst.msk [vmem:[#allocation3 + $0x10] sm:$0xff] %vm329_vm0, %v1368_v5 }
  0x2e   : > { %341 = vst.msk [vmem:[#allocation3 + $0x18] sm:$0xff] %vm329_vm0, %v1368_v5 }
  0x2f   : > { %342 = vst.msk [vmem:[#allocation3 + $0x20] sm:$0xff] %vm329_vm0, %v1368_v5 }
  0x30   : > { %343 = vst.msk [vmem:[#allocation3 + $0x28] sm:$0xff] %vm329_vm0, %v1368_v5 }
  0x31   : > { %344 = vst.msk [vmem:[#allocation3 + $0x30] sm:$0xff] %vm329_vm0, %v1368_v5 }
  0x32   : > { %345 = vst.msk [vmem:[#allocation3 + $0x38] sm:$0xff] %vm329_vm0, %v1368_v5 }
  0x33   : > { %346 = vst.msk [vmem:[#allocation4] sm:$0xff] %vm329_vm0, %v1368_v5 }
  0x34   : > { %347 = vst.msk [vmem:[#allocation4 + $0x8] sm:$0xff] %vm329_vm0, %v1368_v5 }
  0x35   : > { %348 = vst.msk [vmem:[#allocation4 + $0x10] sm:$0xff] %vm329_vm0, %v1368_v5 }
  0x36   : > { %349 = vst.msk [vmem:[#allocation4 + $0x18] sm:$0xff] %vm329_vm0, %v1368_v5 }
  0x37   : > { %350 = vst.msk [vmem:[#allocation4 + $0x20] sm:$0xff] %vm329_vm0, %v1368_v5 }
  0x38   : > { %351 = vst.msk [vmem:[#allocation4 + $0x28] sm:$0xff] %vm329_vm0, %v1368_v5 }
  0x39   : > { %352 = vst.msk [vmem:[#allocation4 + $0x30] sm:$0xff] %vm329_vm0, %v1368_v5 }
  0x3a   : > { %353 = vst.msk [vmem:[#allocation4 + $0x38] sm:$0xff] %vm329_vm0, %v1368_v5 }
  0x3b PF: > { %v1209_v6 = vld [vmem:[%s268_s7 + $0x8] sm:$0xff]  ;;  %v1369_v7 = vmov 0   ;;  %v622_v8 = vld [vmem:[%s1986_s2] sm:$0xff]  ;;  %v624_v10 = vld [vmem:[%s1986_s2 + $0x10] sm:$0xff]  ;;  %vm398_vm1 = vcmask 261120   ;;  %v440_v21 = vlaneseq  ;;  %s1191_s12 = sshll.u32 %s1357_s17, 7 }
  0x3c   : > { %1260 = vset.pattern.permute.xlu1 %v1369_v7  ;;  %1262 = vset.pattern.permute.xlu0 %v1369_v7  ;;  %v1208_v9 = vld [vmem:[%s268_s7] sm:$0xff]  ;;  %v1205_v12 = vld [vmem:[%s1984_s0 + $0x8] sm:$0xff]  ;;  %v1207_v15 = vld [vmem:[%s1984_s0 + $0x18] sm:$0xff]  ;;  %v443_v23 = vstv %s1191_s12  ;;  %vm1989_vm7 = vcmask 7168   ;;  %p1192_p10 = scmp.ne.s32.totalorder %s1357_s17, 3 }
  0x3d   : > { %417 = vmatpush.bf16.msra.mxu0 %v1209_v6  ;;  %1210 = vmatpush.bf16.msra.mxu1 %v1209_v6  ;;  %v1204_v11 = vld [vmem:[%s1984_s0] sm:$0xff]  ;;  %v623_v13 = vld [vmem:[%s1986_s2 + $0x8] sm:$0xff]  ;;  %v1206_v14 = vld [vmem:[%s1984_s0 + $0x10] sm:$0xff]  ;;  %v441_v22 = vand.u32 127, %v440_v21 }
  0x3e   : > { %1211 = vmatpush.bf16.msra.mxu2 %v1209_v6  ;;  %1212 = vmatpush.bf16.msra.mxu3 %v1209_v6  ;;  %v625_v16 = vld [vmem:[%s1986_s2 + $0x18] sm:$0xff]  ;;  %v626_v17 = vld [vmem:[%s1986_s2 + $0x20] sm:$0xff]  ;;  %v627_v18 = vld [vmem:[%s1986_s2 + $0x28] sm:$0xff] }
  0x3f   : > { %639 = vperm.xlu1 %1260, %v622_v8   ;;  %645 = vperm.xlu0 %1262, %v624_v10   ;;  %v628_v19 = vld [vmem:[%s1986_s2 + $0x30] sm:$0xff]  ;;  %v629_v20 = vld [vmem:[%s1986_s2 + $0x38] sm:$0xff]  ;;  %v1511_v24 = vadd.s32 %v443_v23, %v441_v22  ;;  %v1561_v42 = vld [vmem:[#allocation2] sm:$0xff] }
  0x40   : > { %1261 = vset.pattern.permute.xlu2 %v1369_v7  ;;  %v1563_v43 = vld [vmem:[#allocation2 + $0x10] sm:$0xff]  ;;  %v630_v44 = vld [vmem:[#allocation4] sm:$0xff]  ;;  %v1584_v54 = vld [vmem:[#allocation2 + $0x18] sm:$0xff] }
  0x41   : > { %418 = vmatpush.bf16.msra.mxu0 %v1208_v9  ;;  %1213 = vmatpush.bf16.msra.mxu1 %v1208_v9  ;;  %v1582_v53 = vld [vmem:[#allocation2 + $0x30] sm:$0xff]  ;;  %v1586_v55 = vld [vmem:[#allocation2 + $0x20] sm:$0xff]  ;;  %v1610_v1 = vld [vmem:[#allocation2 + $0x8] sm:$0xff] }
  0x42   : > { %1214 = vmatpush.bf16.msra.mxu2 %v1208_v9  ;;  %1215 = vmatpush.bf16.msra.mxu3 %v1208_v9  ;;  %v1612_v2 = vld [vmem:[#allocation2 + $0x38] sm:$0xff]  ;;  %v1614_v3 = vld [vmem:[#allocation2 + $0x28] sm:$0xff] }
  0x43   : > { %642 = vperm.xlu2 %1261, %v623_v13  }
  0x44   : > { %1187 = vmatmul.msk.bf16.vlgmr.msra.gmra.mxu0 %vm398_vm1, %v1204_v11  ;;  %1188 = vmatmul.msk.bf16.vlgmr.msra.gmra.mxu1 %vm398_vm1, %v1205_v12 }
  0x45   : > { %1189 = vmatmul.msk.bf16.vlgmr.msra.gmra.mxu2 %vm398_vm1, %v1206_v14  ;;  %1190 = vmatmul.msk.bf16.vlgmr.msra.gmra.mxu3 %vm398_vm1, %v1207_v15 }
  0x47   : > { %648 = vperm.xlu1 %1260, %v625_v16   ;;  %651 = vperm.xlu0 %1262, %v626_v17  }
  0x4b   : > { %654 = vperm.xlu2 %1261, %v627_v18  }
  0x4f   : > { %657 = vperm.xlu1 %1260, %v628_v19   ;;  %660 = vperm.xlu0 %1262, %v629_v20  }
  0x9d   : > { %v1513_v25 = vpop.permute.xlu2 %642 }
  0x9e   : > { %vm663_vm2 = vcmp.eq.s32.totalorder %v1511_v24, %v1513_v25 }
  0xa5   : > { %v1559_v41 = vpop.permute.xlu2 %654 }
  0xa6   : > { %vm667_vm9 = vcmp.eq.s32.totalorder %v1511_v24, %v1559_v41 }
  0xb1   : > { %v640_v26 = vpop.permute.xlu1 %639  ;;  %v1517_v27 = vpop.permute.xlu0 %645 }
  0xb2   : > { %vm664_vm3 = vcmp.eq.s32.totalorder %v1511_v24, %v1517_v27  ;;  %vm662_vm6 = vcmp.eq.s32.totalorder %v1511_v24, %v640_v26 }
  0xb9   : > { %v1521_v28 = vpop.permute.xlu1 %648  ;;  %v1523_v29 = vpop.permute.xlu0 %651 }
  0xba   : > { %vm665_vm4 = vcmp.eq.s32.totalorder %v1511_v24, %v1521_v28  ;;  %vm666_vm5 = vcmp.eq.s32.totalorder %v1511_v24, %v1523_v29 }
  0xc1   : > { %v1530_v30 = vpop.f32.mrf.mxu0  ;;  %v1532_v31 = vpop.f32.mrf.mxu1 }
  0xc2   : > { %453 = vmax.xlane.f32.xlu0 %v1530_v30  ;;  %v670_v32 = vsel %vm662_vm6, %v1530_v30, 0.0  ;;  %457 = vmax.xlane.f32.xlu1 %v1532_v31  ;;  %v1555_v39 = vpop.permute.xlu0 %660  ;;  %v1557_v40 = vpop.permute.xlu1 %657  ;;  %v672_v13 = vsel %vm664_vm3, %v1532_v31, 0.0 }
  0xc3   : > { %678 = vadd.xlane.f32.xlu2 %v670_v32  ;;  %vm669_vm8 = vcmp.eq.s32.totalorder %v1511_v24, %v1555_v39  ;;  %vm668_vm10 = vcmp.eq.s32.totalorder %v1511_v24, %v1557_v40  ;;  %v632_v39 = vld [vmem:[#allocation4 + $0x10] sm:$0xff]  ;;  %v634_v24 = vld [vmem:[#allocation4 + $0x20] sm:$0xff] }
  0xc8   : > { %v1537_v33 = vpop.f32.mrf.mxu2  ;;  %v1539_v34 = vpop.f32.mrf.mxu3 }
  0xc9   : > { %v1541_v35 = vpop.f32.mrf.mxu1  ;;  %v1546_v36 = vpop.f32.mrf.mxu0  ;;  %v674_v16 = vsel %vm666_vm5, %v1537_v33, 0.0 }
  0xca   : > { %465 = vmax.xlane.f32.xlu0 %v1539_v34  ;;  %459 = vmax.xlane.f32.xlu1 %v1541_v35  ;;  %v673_v14 = vsel %vm665_vm4, %v1541_v35, 0.0  ;;  %v671_v15 = vsel %vm663_vm2, %v1546_v36, 0.0 }
  0xcb   : > { %461 = vmax.xlane.f32.xlu2 %v1537_v33 }
  0xd0   : > { %v1548_v37 = vpop.f32.mrf.mxu2  ;;  %v1550_v38 = vpop.f32.mrf.mxu3 }
  0xd2   : > { %455 = vmax.xlane.f32.xlu0 %v1546_v36  ;;  %467 = vmax.xlane.f32.xlu1 %v1550_v38 }
  0xd3   : > { %463 = vmax.xlane.f32.xlu2 %v1548_v37 }
 0x135   : > { %v454_v45 = vpop.xlane.xlu0 %453  ;;  %v458_v46 = vpop.xlane.xlu1 %457 }
 0x136   : > { %v1566_v47 = vmax.f32 %v1561_v42, %v454_v45  ;;  %v679_v48 = vpop.xlane.xlu2 %678  ;;  %v1569_v49 = vmax.f32 %v1563_v43, %v458_v46 }
 0x137   : > { %v694_v50 = vadd.f32 %v679_v48, %v630_v44 }
 0x138   : > { %v477_v51 = vsub.f32 %v1561_v42, %v1566_v47  ;;  %614 = vst.msk [vmem:[#allocation2] sm:$0xff] %vm1989_vm7, %v1566_v47  ;;  %519 = vperm.xlu2 %1261, %v1566_v47   ;;  %v479_v52 = vsub.f32 %v1563_v43, %v1569_v49  ;;  %529 = vperm.xlu1 %1260, %v1569_v49   ;;  %v505_v42 = vld [vmem:[#allocation3 + $0x20] sm:$0xff] }
 0x139   : > { %616 = vst.msk [vmem:[#allocation2 + $0x10] sm:$0xff] %vm1989_vm7, %v1569_v49 }
 0x13a   : > { %702 = vst.msk [vmem:[#allocation4] sm:$0xff] %vm1989_vm7, %v694_v50 }
 0x13d   : > { %v466_v56 = vpop.xlane.xlu0 %465  ;;  %v460_v57 = vpop.xlane.xlu1 %459 }
 0x13e   : > { %v1589_v58 = vmax.f32 %v1582_v53, %v466_v56  ;;  %v462_v59 = vpop.xlane.xlu2 %461  ;;  %v1592_v60 = vmax.f32 %v1584_v54, %v460_v57 }
 0x13f   : > { %v1595_v61 = vmax.f32 %v1586_v55, %v462_v59 }
 0x140   : > { %v483_v62 = vsub.f32 %v1582_v53, %v1589_v58  ;;  %620 = vst.msk [vmem:[#allocation2 + $0x30] sm:$0xff] %vm1989_vm7, %v1589_v58  ;;  %v480_v63 = vsub.f32 %v1584_v54, %v1592_v60 }
 0x141   : > { %617 = vst.msk [vmem:[#allocation2 + $0x18] sm:$0xff] %vm1989_vm7, %v1592_v60  ;;  %v481_v0 = vsub.f32 %v1586_v55, %v1595_v61  ;;  %539 = vperm.xlu2 %1261, %v1595_v61   ;;  %v489_v55 = vmul.f32 1.442695, %v479_v52 }
 0x142   : > { %618 = vst.msk [vmem:[#allocation2 + $0x20] sm:$0xff] %vm1989_vm7, %v1595_v61  ;;  %v491_v52 = vmul.f32 1.442695, %v480_v63 }
 0x145   : > { %v456_v4 = vpop.xlane.xlu0 %455  ;;  %v468_v5 = vpop.xlane.xlu1 %467 }
 0x146   : > { %v1617_v6 = vmax.f32 %v1610_v1, %v456_v4  ;;  %v464_v7 = vpop.xlane.xlu2 %463  ;;  %v1620_v8 = vmax.f32 %v1612_v2, %v468_v5 }
 0x147   : > { %v1623_v9 = vmax.f32 %v1614_v3, %v464_v7 }
 0x148   : > { %v478_v10 = vsub.f32 %v1610_v1, %v1617_v6  ;;  %615 = vst.msk [vmem:[#allocation2 + $0x8] sm:$0xff] %vm1989_vm7, %v1617_v6  ;;  %524 = vperm.xlu0 %1262, %v1617_v6   ;;  %v484_v11 = vsub.f32 %v1612_v2, %v1620_v8  ;;  %v502_v1 = vld [vmem:[#allocation3 + $0x8] sm:$0xff]  ;;  %v508_v2 = vld [vmem:[#allocation3 + $0x38] sm:$0xff] }
 0x149   : > { %621 = vst.msk [vmem:[#allocation2 + $0x38] sm:$0xff] %vm1989_vm7, %v1620_v8  ;;  %v482_v12 = vsub.f32 %v1614_v3, %v1623_v9  ;;  %549 = vperm.xlu2 %1261, %v1589_v58   ;;  %544 = vperm.xlu1 %1260, %v1623_v9  }
 0x14a   : > { %619 = vst.msk [vmem:[#allocation2 + $0x28] sm:$0xff] %vm1989_vm7, %v1623_v9 }
 0x14b   : > { %v495_v49 = vmul.f32 1.442695, %v482_v12 }
 0x151   : > { %534 = vperm.xlu2 %1261, %v1592_v60   ;;  %554 = vperm.xlu1 %1260, %v1620_v8   ;;  %v504_v60 = vld [vmem:[#allocation3 + $0x18] sm:$0xff] }
 0x172   : > { %682 = vadd.xlane.f32.xlu0 %v672_v13 }
 0x17a   : > { %684 = vadd.xlane.f32.xlu2 %v673_v14 }
 0x17b   : > { %680 = vadd.xlane.f32.xlu1 %v671_v15 }
 0x183   : > { %686 = vadd.xlane.f32.xlu1 %v674_v16 }
 0x192   : > { %v520_v17 = vpop.permute.xlu2 %519 }
 0x193   : > { %v557_v18 = vsub.f32 %v1530_v30, %v520_v17  ;;  %v676_v17 = vsel %vm668_vm10, %v1539_v34, 0.0 }
 0x195   : > { %v565_v19 = vmul.f32 1.442695, %v557_v18  ;;  %v675_v18 = vsel %vm667_vm9, %v1548_v37, 0.0 }
 0x197   : > { %1263 = vpow2.f32 %v565_v19 }
 0x19b   : > { %v540_v20 = vpop.permute.xlu2 %539 }
 0x19c   : > { %v561_v21 = vsub.f32 %v1537_v33, %v540_v20 }
 0x19d   : > { %v1264_v22 = vpop.eup %1263 }
 0x19e   : > { %v573_v23 = vmul.f32 1.442695, %v561_v21  ;;  %581 = vadd.xlane.f32.xlu0 %v1264_v22  ;;  %v631_v21 = vld [vmem:[#allocation4 + $0x8] sm:$0xff] }
 0x1a0   : > { %1265 = vpow2.f32 %v573_v23 }
 0x1a3   : > { %v550_v25 = vpop.permute.xlu2 %549 }
 0x1a4   : > { %v563_v26 = vsub.f32 %v1539_v34, %v550_v25 }
 0x1a6   : > { %v1266_v27 = vpop.eup %1265  ;;  %v577_v28 = vmul.f32 1.442695, %v563_v26  ;;  %v493_v26 = vmul.f32 1.442695, %v481_v0  ;;  %v507_v0 = vld [vmem:[#allocation3 + $0x30] sm:$0xff] }
 0x1a7   : > { %589 = vadd.xlane.f32.xlu0 %v1266_v27 }
 0x1a8   : > { %1267 = vpow2.f32 %v577_v28  ;;  %v501_v28 = vld [vmem:[#allocation3] sm:$0xff] }
 0x1aa   : > { %v530_v29 = vpop.permute.xlu1 %529 }
 0x1ab   : > { %v559_v32 = vsub.f32 %v1532_v31, %v530_v29  ;;  %v535_v50 = vpop.permute.xlu2 %534 }
 0x1ac   : > { %v560_v4 = vsub.f32 %v1541_v35, %v535_v50  ;;  %v677_v35 = vsel %vm669_vm8, %v1550_v38, 0.0 }
 0x1ad   : > { %v569_v44 = vmul.f32 1.442695, %v559_v32 }
 0x1ae   : > { %v1268_v30 = vpop.eup %1267  ;;  %v571_v31 = vmul.f32 1.442695, %v560_v4 }
 0x1af   : > { %593 = vadd.xlane.f32.xlu2 %v1268_v30  ;;  %1269 = vpow2.f32 %v569_v44  ;;  %v497_v44 = vmul.f32 1.442695, %v483_v62 }
 0x1b5   : > { %v1270_v45 = vpop.eup %1269 }
 0x1b6   : > { %585 = vadd.xlane.f32.xlu1 %v1270_v45 }
 0x1ba   : > { %v525_v33 = vpop.permute.xlu0 %524 }
 0x1bb   : > { %v558_v46 = vsub.f32 %v1546_v36, %v525_v33  ;;  %v545_v48 = vpop.permute.xlu1 %544 }
 0x1bc   : > { %v562_v56 = vsub.f32 %v1548_v37, %v545_v48  ;;  %v485_v37 = vmul.f32 1.442695, %v477_v51  ;;  %v503_v48 = vld [vmem:[#allocation3 + $0x10] sm:$0xff] }
 0x1bd   : > { %v567_v57 = vmul.f32 1.442695, %v558_v46 }
 0x1be   : > { %v575_v59 = vmul.f32 1.442695, %v562_v56 }
 0x1bf   : > { %1271 = vpow2.f32 %v567_v57  ;;  %v487_v57 = vmul.f32 1.442695, %v478_v10  ;;  %v506_v10 = vld [vmem:[#allocation3 + $0x28] sm:$0xff] }
 0x1c0   : > { %1273 = vpow2.f32 %v575_v59  ;;  %v499_v59 = vmul.f32 1.442695, %v484_v11  ;;  %v637_v11 = vld [vmem:[#allocation4 + $0x38] sm:$0xff] }
 0x1c1   : > { %1275 = vpow2.f32 %v571_v31 }
 0x1c3   : > { %v555_v5 = vpop.permute.xlu1 %554 }
 0x1c4   : > { %v564_v7 = vsub.f32 %v1550_v38, %v555_v5  ;;  %v633_v38 = vld [vmem:[#allocation4 + $0x18] sm:$0xff] }
 0x1c5   : > { %v1272_v13 = vpop.eup %1271 }
 0x1c6   : > { %v1274_v14 = vpop.eup %1273  ;;  %v579_v15 = vmul.f32 1.442695, %v564_v7  ;;  %583 = vadd.xlane.f32.xlu2 %v1272_v13 }
 0x1c7   : > { %591 = vadd.xlane.f32.xlu1 %v1274_v14  ;;  %v1276_v36 = vpop.eup %1275 }
 0x1c8   : > { %1277 = vpow2.f32 %v579_v15 }
 0x1c9   : > { %1279 = vpow2.f32 %v485_v37 }
 0x1ca   : > { %1281 = vpow2.f32 %v493_v26 }
 0x1cb   : > { %1283 = vpow2.f32 %v497_v44 }
 0x1cc   : > { %1285 = vpow2.f32 %v489_v55 }
 0x1cd   : > { %1287 = vpow2.f32 %v487_v57 }
 0x1ce   : > { %v1278_v16 = vpop.eup %1277  ;;  %587 = vadd.xlane.f32.xlu2 %v1276_v36  ;;  %1289 = vpow2.f32 %v495_v49 }
 0x1cf   : > { %595 = vadd.xlane.f32.xlu0 %v1278_v16  ;;  %692 = vadd.xlane.f32.xlu1 %v677_v35  ;;  %v1280_v27 = vpop.eup %1279  ;;  %1291 = vpow2.f32 %v491_v52 }
 0x1d0   : > { %v509_v29 = vmul.f32 %v1280_v27, %v501_v28  ;;  %v1282_v45 = vpop.eup %1281  ;;  %1293 = vpow2.f32 %v499_v59 }
 0x1d1   : > { %v513_v47 = vmul.f32 %v1282_v45, %v505_v42  ;;  %v1284_v61 = vpop.eup %1283 }
 0x1d2   : > { %v515_v46 = vmul.f32 %v1284_v61, %v507_v0  ;;  %v1286_v62 = vpop.eup %1285 }
 0x1d3   : > { %v511_v50 = vmul.f32 %v1286_v62, %v503_v48  ;;  %v1288_v4 = vpop.eup %1287 }
 0x1d4   : > { %v1290_v6 = vpop.eup %1289  ;;  %v510_v3 = vmul.f32 %v1288_v4, %v502_v1 }
 0x1d5   : > { %v514_v12 = vmul.f32 %v1290_v6, %v506_v10  ;;  %v1292_v54 = vpop.eup %1291 }
 0x1d6   : > { %690 = vadd.xlane.f32.xlu2 %v676_v17  ;;  %v1294_v63 = vpop.eup %1293  ;;  %v512_v8 = vmul.f32 %v1292_v54, %v504_v60 }
 0x1d7   : > { %688 = vadd.xlane.f32.xlu0 %v675_v18  ;;  %v516_v14 = vmul.f32 %v1294_v63, %v508_v2  ;;  %v636_v18 = vld [vmem:[#allocation4 + $0x30] sm:$0xff] }
 0x1e5   : > { %v683_v19 = vpop.xlane.xlu0 %682 }
 0x1e6   : > { %v696_v20 = vadd.f32 %v683_v19, %v632_v39  ;;  %v635_v39 = vld [vmem:[#allocation4 + $0x28] sm:$0xff] }
 0x1e8   : > { %704 = vst.msk [vmem:[#allocation4 + $0x10] sm:$0xff] %vm1989_vm7, %v696_v20 }
 0x1ed   : > { %v685_v22 = vpop.xlane.xlu2 %684 }
 0x1ee   : > { %v697_v23 = vadd.f32 %v685_v22, %v633_v38  ;;  %v681_v25 = vpop.xlane.xlu1 %680 }
 0x1ef   : > { %v695_v41 = vadd.f32 %v681_v25, %v631_v21 }
 0x1f0   : > { %705 = vst.msk [vmem:[#allocation4 + $0x18] sm:$0xff] %vm1989_vm7, %v697_v23 }
 0x1f1   : > { %703 = vst.msk [vmem:[#allocation4 + $0x8] sm:$0xff] %vm1989_vm7, %v695_v41 }
 0x1f6   : > { %v687_v34 = vpop.xlane.xlu1 %686 }
 0x1f7   : > { %v698_v40 = vadd.f32 %v687_v34, %v634_v24 }
 0x1f9   : > { %706 = vst.msk [vmem:[#allocation4 + $0x20] sm:$0xff] %vm1989_vm7, %v698_v40 }
 0x211   : > { %v582_v32 = vpop.xlane.xlu0 %581 }
 0x212   : > { %v597_v30 = vadd.f32 %v582_v32, %v509_v29 }
 0x214   : > { %606 = vst.msk [vmem:[#allocation3] sm:$0xff] %vm1989_vm7, %v597_v30 }
 0x21a   : > { %v590_v51 = vpop.xlane.xlu0 %589 }
 0x21b   : > { %v601_v33 = vadd.f32 %v590_v51, %v513_v47 }
 0x21d   : > { %610 = vst.msk [vmem:[#allocation3 + $0x20] sm:$0xff] %vm1989_vm7, %v601_v33 }
 0x222   : > { %v594_v53 = vpop.xlane.xlu2 %593 }
 0x223   : > { %v603_v58 = vadd.f32 %v594_v53, %v515_v46 }
 0x225   : > { %612 = vst.msk [vmem:[#allocation3 + $0x30] sm:$0xff] %vm1989_vm7, %v603_v58 }
 0x229   : > { %v586_v56 = vpop.xlane.xlu1 %585 }
 0x22a   : > { %v599_v43 = vadd.f32 %v586_v56, %v511_v50 }
 0x22c   : > { %608 = vst.msk [vmem:[#allocation3 + $0x10] sm:$0xff] %vm1989_vm7, %v599_v43 }
 0x239   : > { %v584_v9 = vpop.xlane.xlu2 %583 }
 0x23a   : > { %v598_v31 = vadd.f32 %v584_v9, %v510_v3  ;;  %v592_v5 = vpop.xlane.xlu1 %591 }
 0x23b   : > { %v602_v7 = vadd.f32 %v592_v5, %v514_v12 }
 0x23c   : > { %607 = vst.msk [vmem:[#allocation3 + $0x8] sm:$0xff] %vm1989_vm7, %v598_v31 }
 0x23d   : > { %611 = vst.msk [vmem:[#allocation3 + $0x28] sm:$0xff] %vm1989_vm7, %v602_v7 }
 0x241   : > { %v588_v13 = vpop.xlane.xlu2 %587 }
 0x242   : > { %v600_v15 = vadd.f32 %v588_v13, %v512_v8  ;;  %v596_v36 = vpop.xlane.xlu0 %595  ;;  %v693_v16 = vpop.xlane.xlu1 %692 }
 0x243   : > { %v604_v35 = vadd.f32 %v596_v36, %v516_v14  ;;  %v701_v17 = vadd.f32 %v693_v16, %v637_v11 }
 0x244   : > { %609 = vst.msk [vmem:[#allocation3 + $0x18] sm:$0xff] %vm1989_vm7, %v600_v15 }
 0x245   : > { %613 = vst.msk [vmem:[#allocation3 + $0x38] sm:$0xff] %vm1989_vm7, %v604_v35 }
 0x246   : > { %709 = vst.msk [vmem:[#allocation4 + $0x38] sm:$0xff] %vm1989_vm7, %v701_v17 }
 0x249   : > { %v691_v19 = vpop.xlane.xlu2 %690  ;;  %713 = sbr.rel (%p1192_p10) target bundleno = 670 (0x29e), region = 85 }
 0x24a   : > { %v700_v20 = vadd.f32 %v691_v19, %v636_v18  ;;  %v689_v38 = vpop.xlane.xlu0 %688 }
 0x24b   : > { %v699_v21 = vadd.f32 %v689_v38, %v635_v39 }
 0x24c   : > { %708 = vst.msk [vmem:[#allocation4 + $0x30] sm:$0xff] %vm1989_vm7, %v700_v20 }
 0x24d   : > { %707 = vst.msk [vmem:[#allocation4 + $0x28] sm:$0xff] %vm1989_vm7, %v699_v21 }
 0x24e   : > { %v722_v22 = vld [vmem:[#allocation3] sm:$0xff]  ;;  %v723_v23 = vld [vmem:[#allocation3 + $0x8] sm:$0xff]  ;;  %v724_v25 = vld [vmem:[#allocation3 + $0x10] sm:$0xff]  ;;  %v1370_v57 = vmov 0.0  }
 0x24f   : > { %v725_v41 = vld [vmem:[#allocation3 + $0x18] sm:$0xff]  ;;  %1295 = vlog2.f32 %v722_v22  ;;  %v726_v24 = vld [vmem:[#allocation3 + $0x20] sm:$0xff]  ;;  %v727_v34 = vld [vmem:[#allocation3 + $0x28] sm:$0xff] }
 0x250   : > { %1297 = vlog2.f32 %v723_v23  ;;  %v728_v40 = vld [vmem:[#allocation3 + $0x30] sm:$0xff]  ;;  %v714_v37 = vld [vmem:[#allocation2] sm:$0xff]  ;;  %v729_v26 = vld [vmem:[#allocation3 + $0x38] sm:$0xff] }
 0x251   : > { %1299 = vlog2.f32 %v724_v25  ;;  %v715_v27 = vld [vmem:[#allocation2 + $0x8] sm:$0xff]  ;;  %v770_v28 = vld [vmem:[%s1986_s2] sm:$0xff]  ;;  %v772_v32 = vld [vmem:[%s1986_s2 + $0x10] sm:$0xff] }
 0x252   : > { %1301 = vlog2.f32 %v725_v41  ;;  %v771_v29 = vld [vmem:[%s1986_s2 + $0x8] sm:$0xff]  ;;  %v716_v44 = vld [vmem:[#allocation2 + $0x10] sm:$0xff]  ;;  %v773_v45 = vld [vmem:[%s1986_s2 + $0x18] sm:$0xff]  ;;  %vm778_vm11 = vcmp.ne.s32.totalorder %v770_v28, 0  ;;  %vm780_vm13 = vcmp.ne.s32.totalorder %v772_v32, 0 }
 0x253   : > { %1303 = vlog2.f32 %v726_v24  ;;  %v774_v42 = vld [vmem:[%s1986_s2 + $0x20] sm:$0xff]  ;;  %v775_v47 = vld [vmem:[%s1986_s2 + $0x28] sm:$0xff]  ;;  %vm779_vm12 = vcmp.ne.s32.totalorder %v771_v29, 0  ;;  %v776_v55 = vld [vmem:[%s1986_s2 + $0x30] sm:$0xff]  ;;  %vm781_vm14 = vcmp.ne.s32.totalorder %v773_v45, 0  ;;  %v1193_v43 = vsel %vm778_vm11, 1.0, %v1370_v57 }
 0x254   : > { %1305 = vlog2.f32 %v727_v34  ;;  %v777_v61 = vld [vmem:[%s1986_s2 + $0x38] sm:$0xff]  ;;  %vm782_vm15 = vcmp.ne.s32.totalorder %v774_v42, 0  ;;  %v754_v53 = vld [vmem:[#allocation4] sm:$0xff]  ;;  %vm783_vm0 = vcmp.ne.s32.totalorder %v775_v47, 0  ;;  %vm784_vm1 = vcmp.ne.s32.totalorder %v776_v55, 0  ;;  %v755_v56 = vld [vmem:[#allocation4 + $0x8] sm:$0xff] }
 0x255   : > { %v1296_v30 = vpop.eup %1295  ;;  %1307 = vlog2.f32 %v728_v40  ;;  %vm785_vm2 = vcmp.ne.s32.totalorder %v777_v61, 0  ;;  %v717_v62 = vld [vmem:[#allocation2 + $0x18] sm:$0xff]  ;;  %v1194_v49 = vsel %vm779_vm12, 1.0, %v1370_v57  ;;  %v718_v59 = vld [vmem:[#allocation2 + $0x20] sm:$0xff]  ;;  %v756_v6 = vld [vmem:[#allocation4 + $0x10] sm:$0xff]  ;;  %v1195_v10 = vsel %vm780_vm13, 1.0, %v1370_v57 }
 0x256   : > { %v1298_v51 = vpop.eup %1297  ;;  %v731_v33 = vmul.f32 0.6931472, %v1296_v30  ;;  %1309 = vlog2.f32 %v729_v26  ;;  %v1196_v3 = vsel %vm781_vm14, 1.0, %v1370_v57  ;;  %v719_v12 = vld [vmem:[#allocation2 + $0x28] sm:$0xff]  ;;  %v757_v7 = vld [vmem:[#allocation4 + $0x18] sm:$0xff]  ;;  %v1197_v60 = vsel %vm782_vm15, 1.0, %v1370_v57 }
 0x257   : > { %v1300_v0 = vpop.eup %1299  ;;  %v733_v46 = vmul.f32 0.6931472, %v1298_v51  ;;  %v720_v2 = vld [vmem:[#allocation2 + $0x30] sm:$0xff]  ;;  %v758_v13 = vld [vmem:[#allocation4 + $0x20] sm:$0xff]  ;;  %v1198_v15 = vsel %vm783_vm0, 1.0, %v1370_v57  ;;  %v721_v16 = vld [vmem:[#allocation2 + $0x38] sm:$0xff] }
 0x258   : > { %v1302_v58 = vpop.eup %1301  ;;  %v735_v48 = vmul.f32 0.6931472, %v1300_v0  ;;  %v746_v50 = vadd.f32 %v731_v33, %v714_v37  ;;  %v759_v18 = vld [vmem:[#allocation4 + $0x28] sm:$0xff]  ;;  %v1199_v19 = vsel %vm784_vm1, 1.0, %v1370_v57  ;;  %v760_v21 = vld [vmem:[#allocation4 + $0x30] sm:$0xff]  ;;  %v1200_v23 = vsel %vm785_vm2, 1.0, %v1370_v57 }
 0x259   : > { %v1304_v52 = vpop.eup %1303  ;;  %v737_v4 = vmul.f32 0.6931472, %v1302_v58  ;;  %v747_v1 = vadd.f32 %v733_v46, %v715_v27  ;;  %v761_v41 = vld [vmem:[#allocation4 + $0x38] sm:$0xff] }
 0x25a   : > { %v1306_v9 = vpop.eup %1305  ;;  %v739_v31 = vmul.f32 0.6931472, %v1304_v52  ;;  %v748_v5 = vadd.f32 %v735_v48, %v716_v44  ;;  %v762_v54 = vsub.f32 %v746_v50, %v754_v53 }
 0x25b   : > { %v1308_v63 = vpop.eup %1307  ;;  %v741_v8 = vmul.f32 0.6931472, %v1306_v9  ;;  %v749_v11 = vadd.f32 %v737_v4, %v717_v62  ;;  %v763_v14 = vsub.f32 %v747_v1, %v755_v56 }
 0x25c   : > { %v1310_v36 = vpop.eup %1309  ;;  %v743_v35 = vmul.f32 0.6931472, %v1308_v63  ;;  %v750_v17 = vadd.f32 %v739_v31, %v718_v59  ;;  %v764_v39 = vsub.f32 %v748_v5, %v756_v6  ;;  %v802_v34 = vmul.f32 %v1193_v43, %v762_v54 }
 0x25d   : > { %v745_v20 = vmul.f32 0.6931472, %v1310_v36  ;;  %v751_v38 = vadd.f32 %v741_v8, %v719_v12  ;;  %v765_v22 = vsub.f32 %v749_v11, %v757_v7  ;;  %v803_v40 = vmul.f32 %v1194_v49, %v763_v14  ;;  %v1758_v36 = vld [vmem:[%s1987_s3] sm:$0xff] }
 0x25e   : > { %v752_v25 = vadd.f32 %v743_v35, %v720_v2  ;;  %v766_v24 = vsub.f32 %v750_v17, %v758_v13  ;;  %v804_v27 = vmul.f32 %v1195_v10, %v764_v39  ;;  %v810_v30 = vsel %vm1989_vm7, %v802_v34, 0.0 }
 0x25f   : > { %v753_v37 = vadd.f32 %v745_v20, %v721_v16  ;;  %v767_v26 = vsub.f32 %v751_v38, %v759_v18  ;;  %v805_v28 = vmul.f32 %v1196_v3, %v765_v22  ;;  %v817_v44 = vsel %vm1989_vm7, %v803_v40, 0.0 }
 0x260   : > { %v768_v29 = vsub.f32 %v752_v25, %v760_v21  ;;  %v806_v32 = vmul.f32 %v1197_v60, %v766_v24  ;;  %v811_v47 = vrot.slane %v810_v30, 4  ;;  %v818_v51 = vrot.slane %v817_v44, 4 }
 0x261   : > { %v769_v45 = vsub.f32 %v753_v37, %v761_v41  ;;  %v807_v42 = vmul.f32 %v1198_v15, %v767_v26  ;;  %v824_v55 = vsel %vm1989_vm7, %v804_v27, 0.0  ;;  %v831_v61 = vsel %vm1989_vm7, %v805_v28, 0.0 }
 0x262   : > { %v808_v33 = vmul.f32 %v1199_v19, %v768_v29  ;;  %v838_v0 = vsel %vm1989_vm7, %v806_v32, 0.0  ;;  %v812_v53 = vadd.f32 %v811_v47, %v810_v30  ;;  %v819_v58 = vadd.f32 %v818_v51, %v817_v44 }
 0x263   : > { %v809_v46 = vmul.f32 %v1200_v23, %v769_v45  ;;  %v825_v62 = vrot.slane %v824_v55, 4  ;;  %v832_v48 = vrot.slane %v831_v61, 4  ;;  %v839_v50 = vrot.slane %v838_v0, 4 }
 0x264   : > { %v845_v56 = vsel %vm1989_vm7, %v807_v42, 0.0  ;;  %v852_v57 = vsel %vm1989_vm7, %v808_v33, 0.0  ;;  %v813_v43 = vrot.slane %v812_v53, 2  ;;  %v820_v49 = vrot.slane %v819_v58, 2 }
 0x265   : > { %v826_v52 = vadd.f32 %v825_v62, %v824_v55  ;;  %v846_v59 = vrot.slane %v845_v56, 4  ;;  %v833_v4 = vadd.f32 %v832_v48, %v831_v61  ;;  %v840_v1 = vadd.f32 %v839_v50, %v838_v0 }
 0x266   : > { %v853_v6 = vrot.slane %v852_v57, 4  ;;  %v859_v10 = vsel %vm1989_vm7, %v809_v46, 0.0  ;;  %v814_v3 = vadd.f32 %v813_v43, %v812_v53  ;;  %v821_v9 = vadd.f32 %v820_v49, %v819_v58 }
 0x267   : > { %v827_v12 = vrot.slane %v826_v52, 2  ;;  %v847_v31 = vadd.f32 %v846_v59, %v845_v56  ;;  %v834_v5 = vrot.slane %v833_v4, 2  ;;  %v841_v7 = vrot.slane %v840_v1, 2 }
 0x268   : > { %v854_v54 = vadd.f32 %v853_v6, %v852_v57  ;;  %v860_v60 = vrot.slane %v859_v10, 4  ;;  %v815_v13 = vrot.slane %v814_v3, 1  ;;  %v822_v14 = vrot.slane %v821_v9, 1 }
 0x269   : > { %v828_v63 = vadd.f32 %v827_v12, %v826_v52  ;;  %v848_v2 = vrot.slane %v847_v31, 2  ;;  %v835_v8 = vadd.f32 %v834_v5, %v833_v4  ;;  %v842_v11 = vadd.f32 %v841_v7, %v840_v1 }
 0x26a   : > { %v855_v15 = vrot.slane %v854_v54, 2  ;;  %v1762_v18 = vadd.f32 %v860_v60, %v859_v10  ;;  %v1765_v19 = vrot.slane %v1758_v36, 1  ;;  %v1767_v20 = vadd.f32 %v815_v13, %v814_v3 }
 0x26b   : > { %v829_v16 = vrot.slane %v828_v63, 1  ;;  %v836_v35 = vrot.slane %v835_v8, 1  ;;  %v1760_v17 = vadd.f32 %v848_v2, %v847_v31  ;;  %v843_v39 = vrot.slane %v842_v11, 1 }
 0x26c   : > { %v1769_v38 = vadd.f32 %v822_v14, %v821_v9  ;;  %v1771_v21 = vadd.f32 %v855_v15, %v854_v54  ;;  %v1774_v22 = vrot.slane %v1758_v36, 2  ;;  %v862_v24 = vrot.slane %v1762_v18, 2 }
 0x26d   : > { %v1776_v23 = vadd.f32 %v829_v16, %v828_v63  ;;  %v1778_v25 = vadd.f32 %v836_v35, %v835_v8  ;;  %v850_v41 = vrot.slane %v1760_v17, 1  ;;  %v1782_v34 = vadd.f32 %v843_v39, %v842_v11 }
 0x26e   : > { %v1785_v40 = vrot.slane %v1758_v36, 3  ;;  %1311 = vrcp.f32 %v1758_v36  ;;  %v894_v37 = vand.u32 2147483648, %v1758_v36  ;;  %v1790_v26 = vrot.slane %v1758_v36, 4 }
 0x26f   : > { %v1793_v27 = vrot.slane %v1758_v36, 5  ;;  %v892_v28 = vand.u32 2147483647, %v1758_v36  ;;  %1313 = vrcp.f32 %v1765_v19  ;;  %v1798_v29 = vrot.slane %v1758_v36, 6 }
 0x270   : > { %v907_v32 = vand.u32 2147483647, %v1765_v19  ;;  %v909_v30 = vand.u32 2147483648, %v1765_v19  ;;  %1315 = vrcp.f32 %v1774_v22  ;;  %v1804_v44 = vrot.slane %v1758_v36, 7 }
 0x271   : > { %vm888_vm3 = vweird.f32 %v1758_v36  ;;  %v922_v45 = vand.u32 2147483647, %v1774_v22  ;;  %v924_v42 = vand.u32 2147483648, %v1774_v22  ;;  %v1809_v47 = vor.u32 1.1754944e-38, %v894_v37 }
 0x272   : > { %vm903_vm4 = vweird.f32 %v1765_v19  ;;  %vm918_vm5 = vweird.f32 %v1774_v22  ;;  %1317 = vrcp.f32 %v1785_v40  ;;  %vm1814_vm6 = vcmp.eq.f32.partialorder %v892_v28, 8.507059e+37 }
 0x273   : > { %v1818_v33 = vor.u32 1.1754944e-38, %v909_v30  ;;  %v937_v55 = vand.u32 2147483647, %v1785_v40  ;;  %v939_v61 = vand.u32 2147483648, %v1785_v40  ;;  %1319 = vrcp.f32 %v1790_v26 }
 0x274   : > { %v1312_v0 = vpop.eup %1311  ;;  %vm1823_vm8 = vcmp.eq.f32.partialorder %v907_v32, 8.507059e+37  ;;  %v1827_v53 = vor.u32 1.1754944e-38, %v924_v42  ;;  %v952_v58 = vand.u32 2147483647, %v1790_v26  ;;  %v954_v62 = vand.u32 2147483648, %v1790_v26 }
 0x275   : > { %v1314_v48 = vpop.eup %1313  ;;  %v884_v50 = vmul.f32 %v1312_v0, %v1758_v36  ;;  %vm889_vm10 = vweird.f32 %v1312_v0  ;;  %vm1833_vm11 = vcmp.eq.f32.partialorder %v922_v45, 8.507059e+37  ;;  %1321 = vrcp.f32 %v1793_v27 }
 0x276   : > { %v1316_v57 = vpop.eup %1315  ;;  %v899_v43 = vmul.f32 %v1314_v48, %v1765_v19  ;;  %vm904_vm13 = vweird.f32 %v1314_v48  ;;  %v940_v49 = vor.u32 1.1754944e-38, %v939_v61  ;;  %v1840_v52 = vor.u32 1.1754944e-38, %v954_v62  ;;  %vm1859_vm7 = vmor %vm888_vm3, %vm889_vm10 }
 0x277   : > { %v885_v59 = vsub.f32 1.0, %v884_v50  ;;  %v914_v4 = vmul.f32 %v1316_v57, %v1774_v22  ;;  %vm919_vm14 = vweird.f32 %v1316_v57  ;;  %vm1843_vm15 = vcmp.eq.f32.partialorder %v937_v55, 8.507059e+37  ;;  %vm1871_vm9 = vmor %vm903_vm4, %vm904_vm13 }
 0x278   : > { %v1318_v6 = vpop.eup %1317  ;;  %v900_v10 = vsub.f32 1.0, %v899_v43  ;;  %vm1848_vm1 = vcmp.eq.f32.partialorder %v952_v58, 8.507059e+37  ;;  %v967_v9 = vand.u32 2147483647, %v1793_v27  ;;  %v969_v12 = vand.u32 2147483648, %v1793_v27  ;;  %vm1878_vm3 = vmor %vm918_vm5, %vm919_vm14 }
 0x279   : > { %1323 = vrcp.f32 %v1798_v29  ;;  %v1320_v31 = vpop.eup %1319  ;;  %v886_v5 = vmul.f32 %v1312_v0, %v885_v59  ;;  %v915_v7 = vsub.f32 1.0, %v914_v4  ;;  %v929_v54 = vmul.f32 %v1318_v6, %v1785_v40 }
 0x27a   : > { %vm934_vm2 = vweird.f32 %v1318_v6  ;;  %v901_v63 = vmul.f32 %v1314_v48, %v900_v10  ;;  %v944_v2 = vmul.f32 %v1320_v31, %v1790_v26  ;;  %vm949_vm0 = vweird.f32 %v1320_v31 }
 0x27b   : > { %vm1864_vm12 = vcmp.eq.f32.partialorder %v967_v9, 8.507059e+37  ;;  %v1322_v11 = vpop.eup %1321  ;;  %v887_v13 = vadd.f32 %v1312_v0, %v886_v5  ;;  %v916_v15 = vmul.f32 %v1316_v57, %v915_v7  ;;  %v930_v36 = vsub.f32 1.0, %v929_v54 }
 0x27c   : > { %v970_v16 = vor.u32 1.1754944e-38, %v969_v12  ;;  %v902_v35 = vadd.f32 %v1314_v48, %v901_v63  ;;  %v945_v37 = vsub.f32 1.0, %v944_v2  ;;  %v959_v28 = vmul.f32 %v1322_v11, %v1793_v27 }
 0x27d   : > { %vm964_vm10 = vweird.f32 %v1322_v11  ;;  %v891_v19 = vsel %vm1859_vm7, %v1312_v0, %v887_v13  ;;  %v917_v32 = vadd.f32 %v1316_v57, %v916_v15  ;;  %v931_v30 = vmul.f32 %v1318_v6, %v930_v36 }
 0x27e   : > { %vm978_vm4 = vweird.f32 %v1798_v29  ;;  %v896_v22 = vsel %vm1814_vm6, %v1809_v47, %v891_v19  ;;  %v906_v42 = vsel %vm1871_vm9, %v1314_v48, %v902_v35  ;;  %vm2008_vm5 = vweird.f32 %v1785_v40 }
 0x27f   : > { %v1324_v45 = vpop.eup %1323  ;;  %vm1894_vm13 = vmor %vm2008_vm5, %vm934_vm2  ;;  %v946_v61 = vmul.f32 %v1320_v31, %v945_v37  ;;  %v960_v0 = vsub.f32 1.0, %v959_v28  ;;  %v897_v58 = vmul.f32 %v896_v22, %v1767_v20  ;;  %v911_v62 = vsel %vm1823_vm8, %v1818_v33, %v906_v42 }
 0x280   : > { %v921_v47 = vsel %vm1878_vm3, %v1316_v57, %v917_v32  ;;  %v932_v51 = vadd.f32 %v1318_v6, %v931_v30  ;;  %vm2011_vm7 = vweird.f32 %v1790_v26  ;;  %v912_v48 = vmul.f32 %v911_v62, %v1769_v38 }
 0x281   : > { %vm1907_vm6 = vmor %vm2011_vm7, %vm949_vm0  ;;  %v926_v20 = vsel %vm1833_vm11, %v1827_v53, %v921_v47  ;;  %v947_v50 = vadd.f32 %v1320_v31, %v946_v61  ;;  %v961_v46 = vmul.f32 %v1322_v11, %v960_v0  ;;  %vm2014_vm8 = vweird.f32 %v1793_v27 }
 0x282   : > { %v927_v33 = vmul.f32 %v926_v20, %v1776_v23  ;;  %v936_v57 = vsel %vm1894_vm13, %v1318_v6, %v932_v51  ;;  %vm1921_vm9 = vmor %vm2014_vm8, %vm964_vm10  ;;  %v974_v38 = vmul.f32 %v1324_v45, %v1798_v29  ;;  %vm979_vm14 = vweird.f32 %v1324_v45 }
 0x283   : > { %v941_v53 = vsel %vm1843_vm15, %v940_v49, %v936_v57  ;;  %v951_v56 = vsel %vm1907_vm6, %v1320_v31, %v947_v50  ;;  %v962_v23 = vadd.f32 %v1322_v11, %v961_v46  ;;  %v982_v43 = vand.u32 2147483647, %v1798_v29  ;;  %vm1952_vm11 = vmor %vm978_vm4, %vm979_vm14 }
 0x284   : > { %v942_v59 = vmul.f32 %v941_v53, %v1778_v25  ;;  %v956_v27 = vsel %vm1848_vm1, %v1840_v52, %v951_v56  ;;  %v975_v4 = vsub.f32 1.0, %v974_v38  ;;  %v984_v6 = vand.u32 2147483648, %v1798_v29 }
 0x285   : > { %v851_v1 = vadd.f32 %v850_v41, %v1760_v17  ;;  %v857_v49 = vrot.slane %v1771_v21, 1  ;;  %v966_v10 = vsel %vm1921_vm9, %v1322_v11, %v962_v23  ;;  %1325 = vrcp.f32 %v1804_v44 }
 0x286   : > { %v863_v25 = vadd.f32 %v862_v24, %v1762_v18  ;;  %v971_v52 = vsel %vm1864_vm12, %v970_v16, %v966_v10  ;;  %v976_v3 = vmul.f32 %v1324_v45, %v975_v4  ;;  %v957_v9 = vmul.f32 %v956_v27, %v1782_v34 }
 0x287   : > { %vm983_vm15 = vcmp.eq.f32.partialorder %v982_v43, 8.507059e+37  ;;  %v985_v41 = vor.u32 1.1754944e-38, %v984_v6  ;;  %v1003_v12 = vsub.f32 0.0, %v897_v58  ;;  %v1004_v5 = vsub.f32 0.0, %v912_v48 }
 0x288   : > { %v977_v31 = vadd.f32 %v1324_v45, %v976_v3  ;;  %v1005_v7 = vsub.f32 0.0, %v927_v33  ;;  %v1006_v18 = vsub.f32 0.0, %v942_v59  ;;  %v858_v24 = vadd.f32 %v857_v49, %v1771_v21 }
 0x289   : > { %v972_v54 = vmul.f32 %v971_v52, %v851_v1  ;;  %v1019_v60 = vrot.slane %v1004_v5, 7  ;;  %vm1020_vm12 = vcmask 1041409   ;;  %v864_v2 = vrot.slane %v863_v25, 1 }
 0x28a   : > { %v981_v34 = vsel %vm1952_vm11, %v1324_v45, %v977_v31  ;;  %v1022_v29 = vrot.slane %v1005_v7, 6  ;;  %v1007_v11 = vsub.f32 0.0, %v957_v9  ;;  %vm1023_vm0 = vcmask 1042434  }
 0x28b   : > { %v1326_v63 = vpop.eup %1325  ;;  %v986_v8 = vsel %vm983_vm15, %v985_v41, %v981_v34  ;;  %vm993_vm1 = vweird.f32 %v1804_v44  ;;  %v1021_v14 = vsel %vm1020_vm12, %v1019_v60, %v1003_v12  ;;  %v1025_v15 = vrot.slane %v1006_v18, 5 }
 0x28c   : > { %v989_v13 = vmul.f32 %v1326_v63, %v1804_v44  ;;  %v987_v36 = vmul.f32 %v986_v8, %v858_v24  ;;  %v999_v21 = vand.u32 2147483648, %v1804_v44  ;;  %v1024_v16 = vsel %vm1023_vm0, %v1022_v29, %v1021_v14 }
 0x28d   : > { %vm1026_vm2 = vcmask 1043459   ;;  %vm994_vm3 = vweird.f32 %v1326_v63  ;;  %v997_v39 = vand.u32 2147483647, %v1804_v44  ;;  %v1008_v37 = vsub.f32 0.0, %v972_v54 }
 0x28e   : > { %v990_v35 = vsub.f32 1.0, %v989_v13  ;;  %v1028_v28 = vrot.slane %v1007_v11, 4  ;;  %v1027_v32 = vsel %vm1026_vm2, %v1025_v15, %v1024_v16  ;;  %vm1029_vm10 = vcmask 1044484   ;;  %vm995_vm4 = vmor %vm993_vm1, %vm994_vm3 }
 0x28f   : > { %v1000_v30 = vor.u32 1.1754944e-38, %v999_v21  ;;  %v1009_v45 = vsub.f32 0.0, %v987_v36  ;;  %v865_v22 = vadd.f32 %v864_v2, %v863_v25  ;;  %vm998_vm5 = vcmp.eq.f32.partialorder %v997_v39, 8.507059e+37 }
 0x290   : > { %v991_v19 = vmul.f32 %v1326_v63, %v990_v35  ;;  %v1031_v55 = vrot.slane %v1008_v37, 3  ;;  %v1030_v61 = vsel %vm1029_vm10, %v1028_v28, %v1027_v32  ;;  %vm1032_vm13 = vcmask 1045509  }
 0x291   : > { %v1034_v62 = vrot.slane %v1009_v45, 2  ;;  %vm1035_vm7 = vcmask 1046534   ;;  %vm1038_vm6 = vcmask 1047559   ;;  %vm2019_vm8 = vcmask 7168  }
 0x292   : > { %v992_v42 = vadd.f32 %v1326_v63, %v991_v19  ;;  %v1033_v51 = vsel %vm1032_vm13, %v1031_v55, %v1030_v61 }
 0x293   : > { %v1036_v48 = vsel %vm1035_vm7, %v1034_v62, %v1033_v51 }
 0x294   : > { %v996_v0 = vsel %vm995_vm4, %v1326_v63, %v992_v42 }
 0x295   : > { %v1001_v58 = vsel %vm998_vm5, %v1000_v30, %v996_v0 }
 0x296   : > { %v1002_v47 = vmul.f32 %v1001_v58, %v865_v22 }
 0x298   : > { %v1010_v40 = vsub.f32 0.0, %v1002_v47 }
 0x29a   : > { %v1037_v20 = vrot.slane %v1010_v40, 1 }
 0x29c   : > { %v1039_v44 = vsel %vm1038_vm6, %v1037_v20, %v1036_v48 }
 0x29d   : > { %1041 = vst.msk [vmem:[%s1988_s4] sm:$0xff] %vm2019_vm8, %v1039_v44 }
 0x29e PF: > { %s14_s19 = sadd.s32 1, %s1365_s19   ;;  %s2020_s15 = smov %s1353_s16 }
 0x29f   : > { %p11_p11 = scmp.ge.s32.totalorder %s14_s19, 6   ;;  %s2021_s16 = smov %s1431_s23 }
 0x2a0   : > { %s2022_s17 = smov %s1361_s18  ;;  %s2023_s18 = smov %s2025_s20 }
 0x2a1   :  { %13 = sbr.rel (!%p11_p11) target bundleno = 3 (0x3), region = 129 }

</bundles_post_ra>
